<compile_context>
chip_gen: v5e
topology: v5e:2x2
jax: 0.10.0
libtpu: 0.0.40
codegen_flags: <defaults>
</compile_context>

<pallas_src>
import jax
import jax.numpy as jnp
from jax.experimental import pallas as pl
from jax.experimental.pallas import tpu as pltpu

# ---------------------------------------------------------------------------
# Model configuration (small, deterministic, synthetic)
# ---------------------------------------------------------------------------
BATCH = 256                      # multiple grid steps so the pipeline is real
IN_DIM = 32
HIDDEN = 128                     # lane-dense trunk width
HEAD_DIMS = (16, 8, 4)           # three task heads
N_HEADS = len(HEAD_DIMS)
HEADS_SUM = sum(HEAD_DIMS)       # 28
HEADS_PAD = 128                  # fused head output padded to one full lane tile
TILE_M = 128                     # batch rows per grid step / MXU pass


def _multitask_kernel(x_ref, wb_ref, bb_ref, wh_ref, bh_ref, o_ref):
    """Fused trunk + all task heads for one batch tile.

    x_ref : (TILE_M, IN_DIM)      activations (streamed per grid step)
    wb_ref: (IN_DIM, HIDDEN)      shared trunk weight   (VMEM-resident)
    bb_ref: (1, HIDDEN)           shared trunk bias     (VMEM-resident)
    wh_ref: (HIDDEN, HEADS_PAD)   all head weights, concatenated + zero-padded
    bh_ref: (1, HEADS_PAD)        all head biases,  concatenated + zero-padded
    o_ref : (TILE_M, HEADS_PAD)   fused lane-dense output tile
    """
    # Shared trunk: z = relu(x @ Wb + bb); f32 accumulation, f32 epilogue.
    z = jnp.dot(x_ref[...], wb_ref[...], preferred_element_type=jnp.float32)
    z = jnp.maximum(z + bb_ref[...], 0.0)

    # All heads in ONE lane-dense matmul + bias -> single unmasked store.
    o_ref[...] = (jnp.dot(z, wh_ref[...], preferred_element_type=jnp.float32)
                  + bh_ref[...]).astype(o_ref.dtype)


def _pack_heads(params):
    """Concatenate per-head weights/biases into one lane-dense padded slab."""
    w = jnp.concatenate([params[f"w{i}"] for i in range(N_HEADS)], axis=1)
    b = jnp.concatenate([params[f"b{i}"] for i in range(N_HEADS)], axis=1)
    w = jnp.pad(w, ((0, 0), (0, HEADS_PAD - HEADS_SUM)))
    b = jnp.pad(b, ((0, 0), (0, HEADS_PAD - HEADS_SUM)))
    return w, b


def multitask_forward(x, params):
    """Run the fused multi-task forward pass.

    x      : [BATCH, IN_DIM] float32
    params : dict with 'wb','bb' and 'w{i}','b{i}' for each head
    returns: list of N_HEADS output arrays, shapes [BATCH, HEAD_DIMS[i]]
    """
    wh, bh = _pack_heads(params)
    grid = (pl.cdiv(BATCH, TILE_M),)

    flops = 2 * BATCH * (IN_DIM * HIDDEN + HIDDEN * HEADS_PAD)
    bytes_accessed = 4 * (BATCH * IN_DIM + IN_DIM * HIDDEN + HIDDEN
                          + HIDDEN * HEADS_PAD + HEADS_PAD
                          + BATCH * HEADS_PAD)

    out_fused = pl.pallas_call(
        _multitask_kernel,
        out_shape=jax.ShapeDtypeStruct((BATCH, HEADS_PAD), jnp.float32),
        grid=grid,
        in_specs=[
            # activations stream over the batch grid
            pl.BlockSpec((TILE_M, IN_DIM), lambda i: (i, 0)),
            # weights/biases: constant index_map -> loaded once, VMEM-resident
            pl.BlockSpec((IN_DIM, HIDDEN), lambda i: (0, 0)),
            pl.BlockSpec((1, HIDDEN), lambda i: (0, 0)),
            pl.BlockSpec((HIDDEN, HEADS_PAD), lambda i: (0, 0)),
            pl.BlockSpec((1, HEADS_PAD), lambda i: (0, 0)),
        ],
        out_specs=pl.BlockSpec((TILE_M, HEADS_PAD), lambda i: (i, 0)),
        compiler_params=pltpu.CompilerParams(
            dimension_semantics=("parallel",)),   # shards batch across v7x TCs
        cost_estimate=pl.CostEstimate(flops=flops, transcendentals=0,
                                      bytes_accessed=bytes_accessed),
    )(x, params["wb"], params["bb"], wh, bh)

    # Split the fused lane-dense output back into per-task arrays (free slices).
    outs, off = [], 0
    for d in HEAD_DIMS:
        outs.append(out_fused[:, off:off + d])
        off += d
    return outs


def init_params(key):
    """Deterministic synthetic parameter init (matches layer shapes)."""
    keys = jax.random.split(key, 2 + 2 * N_HEADS)
    params = {
        "wb": jax.random.normal(keys[0], (IN_DIM, HIDDEN), jnp.float32) * 0.1,
        "bb": jax.random.normal(keys[1], (1, HIDDEN), jnp.float32) * 0.1,
    }
    for i, d in enumerate(HEAD_DIMS):
        params[f"w{i}"] = (jax.random.normal(keys[2 + 2 * i],
                                             (HIDDEN, d), jnp.float32) * 0.1)
        params[f"b{i}"] = (jax.random.normal(keys[3 + 2 * i],
                                             (1, d), jnp.float32) * 0.1)
    # log_vars parameter exists in the module but is not used in forward().
    params["log_vars"] = jnp.zeros((N_HEADS,), jnp.float32)
    return params


def reference_forward(x, params):
    """Pure-JAX reference of the same forward pass (for sanity check)."""
    z = jnp.maximum(x @ params["wb"] + params["bb"], 0.0)
    return [z @ params[f"w{i}"] + params[f"b{i}"] for i in range(N_HEADS)]


if __name__ == "__main__":
    key = jax.random.PRNGKey(0)
    kx, kp = jax.random.split(key)

    x = jax.random.normal(kx, (BATCH, IN_DIM), jnp.float32)
    params = init_params(kp)

    outs = multitask_forward(x, params)
    outs = [jax.block_until_ready(o) for o in outs]

    refs = reference_forward(x, params)
    for o, r, d in zip(outs, refs, HEAD_DIMS):
        assert o.shape == (BATCH, d), o.shape
        assert jnp.allclose(o, r, atol=1e-5, rtol=1e-5), "mismatch vs reference"

    print("KERNEL_OK")
</pallas_src>

<mosaic_0001>
module attributes {stable_mosaic.version = 11 : i64} {
  func.func @_multitask_kernel(%arg0: i32, %arg1: memref<128x32xf32, #tpu.memory_space<vmem>>, %arg2: memref<32x128xf32, #tpu.memory_space<vmem>>, %arg3: memref<1x128xf32, #tpu.memory_space<vmem>>, %arg4: memref<128x128xf32, #tpu.memory_space<vmem>>, %arg5: memref<1x128xf32, #tpu.memory_space<vmem>>, %arg6: memref<128x128xf32, #tpu.memory_space<vmem>>) attributes {dimension_semantics = [#tpu.dimension_semantics<parallel>], iteration_bounds = array<i64: 2>, scalar_prefetch = 0 : i64, scratch_operands = 0 : i64, tpu.core_type = #tpu.core_type<tc>, window_params = [{transform_indices = @transform_0, window_bounds = array<i64: 128, 32>}, {pipeline_mode = #tpu.pipeline_mode<synchronous>, transform_indices = @transform_1, window_bounds = array<i64: 32, 128>}, {pipeline_mode = #tpu.pipeline_mode<synchronous>, transform_indices = @transform_2, window_bounds = array<i64: 1, 128>}, {pipeline_mode = #tpu.pipeline_mode<synchronous>, transform_indices = @transform_3, window_bounds = array<i64: 128, 128>}, {pipeline_mode = #tpu.pipeline_mode<synchronous>, transform_indices = @transform_4, window_bounds = array<i64: 1, 128>}, {transform_indices = @transform_5, window_bounds = array<i64: 128, 128>}]} {
    %c0 = arith.constant 0 : index
    %c0_0 = arith.constant 0 : index
    %0 = vector.load %arg1[%c0, %c0_0] : memref<128x32xf32, #tpu.memory_space<vmem>>, vector<128x32xf32>
    %c0_1 = arith.constant 0 : index
    %c0_2 = arith.constant 0 : index
    %1 = vector.load %arg2[%c0_1, %c0_2] : memref<32x128xf32, #tpu.memory_space<vmem>>, vector<32x128xf32>
    %cst = arith.constant dense<0.000000e+00> : vector<128x128xf32>
    %2 = tpu.matmul %0, %1, %cst {dimension_numbers = #tpu.dot_dimension_numbers<[1], [0], [0], [1], [0, 0, 1, 1], [], []>} : vector<128x32xf32>, vector<32x128xf32>, vector<128x128xf32> -> vector<128x128xf32>
    %c0_3 = arith.constant 0 : index
    %c0_4 = arith.constant 0 : index
    %3 = vector.load %arg3[%c0_3, %c0_4] : memref<1x128xf32, #tpu.memory_space<vmem>>, vector<1x128xf32>
    %4 = vector.broadcast %3 : vector<1x128xf32> to vector<128x128xf32>
    %5 = arith.addf %2, %4 : vector<128x128xf32>
    %cst_5 = arith.constant 0.000000e+00 : f32
    %6 = vector.broadcast %cst_5 : f32 to vector<128x128xf32>
    %7 = arith.maximumf %5, %6 : vector<128x128xf32>
    %c0_6 = arith.constant 0 : index
    %c0_7 = arith.constant 0 : index
    %8 = vector.load %arg4[%c0_6, %c0_7] : memref<128x128xf32, #tpu.memory_space<vmem>>, vector<128x128xf32>
    %cst_8 = arith.constant dense<0.000000e+00> : vector<128x128xf32>
    %9 = tpu.matmul %7, %8, %cst_8 {dimension_numbers = #tpu.dot_dimension_numbers<[1], [0], [0], [1], [0, 0, 1, 1], [], []>} : vector<128x128xf32>, vector<128x128xf32>, vector<128x128xf32> -> vector<128x128xf32>
    %c0_9 = arith.constant 0 : index
    %c0_10 = arith.constant 0 : index
    %10 = vector.load %arg5[%c0_9, %c0_10] : memref<1x128xf32, #tpu.memory_space<vmem>>, vector<1x128xf32>
    %11 = vector.broadcast %10 : vector<1x128xf32> to vector<128x128xf32>
    %12 = arith.addf %9, %11 : vector<128x128xf32>
    %c0_11 = arith.constant 0 : index
    %c0_12 = arith.constant 0 : index
    %13 = vector.load %arg6[%c0_11, %c0_12] : memref<128x128xf32, #tpu.memory_space<vmem>>, vector<128x128xf32>
    tpu.vector_store %arg6[%c0_11, %c0_12], %12 {strides = array<i32>} : memref<128x128xf32, #tpu.memory_space<vmem>>, vector<128x128xf32>,
    return
  }
  func.func @transform_0(%arg0: i32) -> (i32, i32) {
    %c0_i32 = arith.constant 0 : i32
    %c0_i32_0 = arith.constant 0 : i32
    return %arg0, %c0_i32 : i32, i32
  }
  func.func @transform_1(%arg0: i32) -> (i32, i32) {
    %c0_i32 = arith.constant 0 : i32
    %c0_i32_0 = arith.constant 0 : i32
    %c0_i32_1 = arith.constant 0 : i32
    return %c0_i32, %c0_i32_0 : i32, i32
  }
  func.func @transform_2(%arg0: i32) -> (i32, i32) {
    %c0_i32 = arith.constant 0 : i32
    %c0_i32_0 = arith.constant 0 : i32
    %c0_i32_1 = arith.constant 0 : i32
    return %c0_i32, %c0_i32_0 : i32, i32
  }
  func.func @transform_3(%arg0: i32) -> (i32, i32) {
    %c0_i32 = arith.constant 0 : i32
    %c0_i32_0 = arith.constant 0 : i32
    %c0_i32_1 = arith.constant 0 : i32
    return %c0_i32, %c0_i32_0 : i32, i32
  }
  func.func @transform_4(%arg0: i32) -> (i32, i32) {
    %c0_i32 = arith.constant 0 : i32
    %c0_i32_0 = arith.constant 0 : i32
    %c0_i32_1 = arith.constant 0 : i32
    return %c0_i32, %c0_i32_0 : i32, i32
  }
  func.func @transform_5(%arg0: i32) -> (i32, i32) {
    %c0_i32 = arith.constant 0 : i32
    %c0_i32_0 = arith.constant 0 : i32
    return %arg0, %c0_i32 : i32, i32
  }
}

</mosaic_0001>

<bundles_post_ra>
// kernel: tpu_custom_call.1
= control target key start
LH: loop header
LB: loop body
LE: loop exit
PB: predicated region body
PF: predicated region fallthrough
CT: control target
= control target key end

     0   :  { %10 = vsyncpa [#allocation3], 0  ;;  %s970_s0 = inlined_call_operand.vmem [shape: f32[256,32], index: 0, kind: input, shape index: {}]   ;;  %s971_s1 = inlined_call_operand.vmem [shape: f32[32,128], index: 1, kind: input, shape index: {}]   ;;  %s972_s2 = inlined_call_operand.vmem [shape: f32[1,128], index: 2, kind: input, shape index: {}]   ;;  %s973_s3 = inlined_call_operand.vmem [shape: f32[128,128], index: 3, kind: input, shape index: {}]   ;;  %s974_s4 = inlined_call_operand.vmem [shape: f32[1,128], index: 4, kind: input, shape index: {}]   ;;  %s975_s5 = inlined_call_operand.hbm [shape: f32[256,128], index: 5, kind: output, shape index: {}]  }
   0x1   :  { %12 = vsyncpa [#allocation3 + $0x1], 0  ;;  %s763_s18 = smov 0   ;;  %s765_s19 = smov 0  }
   0x2   :  { %s767_s20 = smov 0   ;;  %s769_s21 = smov 0  }
   0x3 LB: > { %s784_s22 = sadd.s32 4294967295, %s729_s21   ;;  %s559_s23 = sadd.s32 4294967294, %s729_s21   ;;  %s729_s21 = sphi %s769_s21, %s981_s21   ;;  %s725_s20 = sphi %s767_s20, %s980_s20   ;;  %s721_s19 = sphi %s765_s19, %s979_s19   ;;  %s717_s18 = sphi %s763_s18, %s978_s18  }
   0x4   : > { %s788_s24 = sadd.s32 1, %s729_s21   ;;  %s135_s25 = sadd.s32 1, %s725_s20 }
   0x5   : > { %s132_s26 = ssub.s32 %s729_s21, %s788_s24  ;;  %p145_p0 = scmp.ne.s32.totalorder %s725_s20, %s721_s19 }
   0x6   : > { %p133_p1 = scmp.eq.s32.totalorder %s132_s26, 0  ;;  %p146_p2 = scmp.eq.s32.totalorder %s784_s22, 1 }
   0x7   : > { %p151_p3 = scmp.ne.s32.totalorder %s721_s19, %s717_s18  ;;  %p152_p4 = scmp.eq.s32.totalorder %s559_s23, 1 }
   0x8   : > { %s799_s27 = scalar_select %p133_p1, %s725_s20, %s135_s25  }
   0x9   : > { %p801_p5 = por %p146_p2, %p145_p0  ;;  %p805_p6 = por %p152_p4, %p151_p3 }
   0xa   : > { %p562_p7 = scmp.ge.s32.totalorder %s729_s21, 1  ;;  %p191_p8 = scmp.lt.s32.totalorder %s729_s21, 3 }
   0xc   : > { %p192_p9 = pnand %p562_p7, %p191_p8 }
   0xd   : > { %s564_s9 = sshll.u32 (!%p192_p9), %s784_s22, 4  ;;  %s216_s30 = sand.u32 (!%p192_p9), 1, %s721_s19  }
   0xe   : > { %195 = sbr.rel (%p192_p9) target bundleno = 399 (0x18f), region = 40  ;;  %p220_p10 = scmp.lt.s32.totalorder (!%p192_p9), %s564_s9, 31 }
   0xf   : > { %s563_s6 = sshll.u32 (!%p192_p9), %s216_s30, 7  ;;  %s587_s10 = sshll.u32 (!%p192_p9), %s784_s22, 7 }
  0x10   : > { %s493_s13 = scalar_lea.hbm (!%p192_p9), %s975_s5, %s587_s10  ;;  %s482_s16 = scalar_lea.sflag (!%p192_p9), [#allocation3], %s216_s30 }
  0x11   : > { %s496_s15 = sshll.u32 (!%p192_p9), %s493_s13, 4  ;;  %s687_s26 = scalar_lea.hbm (!%p192_p9), %s975_s5, 256  ;;  %s497_s15 = int_to_ptr.hbm [resolvable:$true] %s496_s15 }
  0x12   : > { %s681_s23 = sshra.s32 (!%p192_p9), %s497_s15, 4  ;;  %s682_s23 = int_to_ptr.hbm [resolvable:$true] %s681_s23 }
  0x13   : > { %v245_v0 = vld [vmem:[%s971_s1 + $0x18] sm:$0xff]  ;;  %v244_v1 = vld [vmem:[%s971_s1 + $0x10] sm:$0xff]  ;;  %v243_v2 = vld [vmem:[%s971_s1 + $0x8] sm:$0xff]  ;;  %s983_s9 = smov (!%p220_p10, %s564_s9), 31  ;;  %vm250_vm0 = vcmask 261120   ;;  %s683_s22 = scalar_lea.hbm %s682_s23, 128 }
  0x14   : > { %311 = vmatpush.msra.mxu0 %v245_v0  ;;  %588 = vmatpush.msra.mxu3 %v245_v0  ;;  %v242_v3 = vld [vmem:[%s971_s1] sm:$0xff]  ;;  %s565_s14 = sshll.u32 %s983_s9, 3  ;;  %v395_v13 = vld [vmem:[%s973_s3 + $0x78] sm:$0xff]  ;;  %v394_v14 = vld [vmem:[%s973_s3 + $0x70] sm:$0xff]  ;;  %s918_s9 = scalar_lea.vmem [#allocation2], %s563_s6 }
  0x15   : > { %s827_s17 = scalar_lea.vmem %s970_s0, %s565_s14  ;;  %400 = vmatpush.msra.mxu1 %v395_v13  ;;  %592 = vmatpush.msra.mxu2 %v395_v13  ;;  %v393_v15 = vld [vmem:[%s973_s3 + $0x68] sm:$0xff]  ;;  %v392_v17 = vld [vmem:[%s973_s3 + $0x60] sm:$0xff]  ;;  %v391_v19 = vld [vmem:[%s973_s3 + $0x58] sm:$0xff]  ;;  %s494_s14 = sshll.u32 %s918_s9, 4  ;;  %s495_s14 = int_to_ptr.vmem [resolvable:$true] %s494_s14 }
  0x16   : > { %312 = vmatpush.msra.mxu0 %v244_v1  ;;  %589 = vmatpush.msra.mxu3 %v244_v1  ;;  %v226_v4 = vld [vmem:[%s827_s17] sm:$0xff]  ;;  %v227_v5 = vld [vmem:[%s827_s17 + $0x8] sm:$0xff]  ;;  %v228_v6 = vld [vmem:[%s827_s17 + $0x10] sm:$0xff]  ;;  %p684_p11 = scmp.ne.s32.totalorder %s682_s23, %s683_s22  ;;  %p688_p0 = scmp.lt.s32.totalorder %s682_s23, %s975_s5 }
  0x17   : > { %v229_v7 = vld [vmem:[%s827_s17 + $0x18] sm:$0xff]  ;;  %v236_v8 = vld [vmem:[%s827_s17 + $0x50] sm:$0xff]  ;;  %v230_v9 = vld [vmem:[%s827_s17 + $0x20] sm:$0xff]  ;;  %401 = vmatpush.msra.mxu1 %v394_v14  ;;  %594 = vmatpush.msra.mxu2 %v394_v14  ;;  %p689_p1 = scmp.lt.s32.totalorder %s687_s26, %s683_s22 }
  0x18   : > { %313 = vmatpush.msra.mxu0 %v243_v2  ;;  %590 = vmatpush.msra.mxu3 %v243_v2  ;;  %v237_v10 = vld [vmem:[%s827_s17 + $0x58] sm:$0xff]  ;;  %v231_v11 = vld [vmem:[%s827_s17 + $0x28] sm:$0xff]  ;;  %v238_v12 = vld [vmem:[%s827_s17 + $0x60] sm:$0xff]  ;;  %p685_p12 = pnand %p684_p11, %p801_p5 }
  0x19   : > { %v232_v16 = vld [vmem:[%s827_s17 + $0x30] sm:$0xff]  ;;  %v239_v18 = vld [vmem:[%s827_s17 + $0x68] sm:$0xff]  ;;  %402 = vmatpush.msra.mxu1 %v393_v15  ;;  %596 = vmatpush.msra.mxu2 %v393_v15  ;;  %v233_v22 = vld [vmem:[%s827_s17 + $0x38] sm:$0xff]  ;;  %p690_p2 = por %p689_p1, %p688_p0 }
  0x1a   : > { %314 = vmatpush.msra.mxu0 %v242_v3  ;;  %591 = vmatpush.msra.mxu3 %v242_v3  ;;  %v390_v20 = vld [vmem:[%s973_s3 + $0x50] sm:$0xff]  ;;  %v389_v21 = vld [vmem:[%s973_s3 + $0x48] sm:$0xff]  ;;  %v388_v23 = vld [vmem:[%s973_s3 + $0x40] sm:$0xff]  ;;  %p686_p13 = pneg %p685_p12 }
  0x1b   : > { %566 = vmatmul.msk.f32.vlgmr.msra.gmra.mxu0 %vm250_vm0, %v226_v4  ;;  %576 = vmatmul.msk.f32.vlgmr.msra.gmra.mxu3 %vm250_vm0, %v236_v8  ;;  %v240_v24 = vld [vmem:[%s827_s17 + $0x70] sm:$0xff]  ;;  %v387_v25 = vld [vmem:[%s973_s3 + $0x38] sm:$0xff]  ;;  %v385_v27 = vld [vmem:[%s973_s3 + $0x28] sm:$0xff] }
  0x1c   : > { %593 = vmatpush.msrb.mxu3 %v395_v13  ;;  %403 = vmatpush.msra.mxu1 %v392_v17  ;;  %v386_v26 = vld [vmem:[%s973_s3 + $0x30] sm:$0xff]  ;;  %v234_v28 = vld [vmem:[%s827_s17 + $0x40] sm:$0xff]  ;;  %v241_v30 = vld [vmem:[%s827_s17 + $0x78] sm:$0xff]  ;;  %p691_p3 = pnand %p690_p2, %p686_p13 }
  0x1d   : > { %598 = vmatpush.msra.mxu2 %v392_v17  ;;  %v384_v29 = vld [vmem:[%s973_s3 + $0x20] sm:$0xff]  ;;  %v383_v31 = vld [vmem:[%s973_s3 + $0x18] sm:$0xff]  ;;  %v235_v32 = vld [vmem:[%s827_s17 + $0x48] sm:$0xff] }
  0x1e   : > { %595 = vmatpush.msrb.mxu3 %v394_v14  ;;  %404 = vmatpush.msra.mxu1 %v391_v19  ;;  %v382_v33 = vld [vmem:[%s973_s3 + $0x10] sm:$0xff]  ;;  %v381_v34 = vld [vmem:[%s973_s3 + $0x8] sm:$0xff]  ;;  %v380_v35 = vld [vmem:[%s973_s3] sm:$0xff] }
  0x1f   : > { %600 = vmatpush.msra.mxu2 %v391_v19  ;;  %v665_v36 = vld [vmem:[%s972_s2] ss:$0 sm:$0xff] }
  0x20   : > { %597 = vmatpush.msrb.mxu3 %v393_v15  ;;  %405 = vmatpush.msra.mxu1 %v390_v20 }
  0x21   : > { %602 = vmatpush.msra.mxu2 %v390_v20 }
  0x22   : > { %599 = vmatpush.msrb.mxu3 %v392_v17  ;;  %406 = vmatpush.msra.mxu1 %v389_v21 }
  0x23   : > { %567 = vmatmul.msk.f32.gmra.mxu0 %vm250_vm0, %v227_v5  ;;  %577 = vmatmul.msk.f32.gmra.mxu3 %vm250_vm0, %v237_v10 }
  0x24   : > { %601 = vmatpush.msrb.mxu3 %v391_v19  ;;  %604 = vmatpush.msra.mxu2 %v389_v21 }
  0x25   : > { %407 = vmatpush.msra.mxu1 %v388_v23 }
  0x26   : > { %603 = vmatpush.msrb.mxu3 %v390_v20  ;;  %606 = vmatpush.msra.mxu2 %v388_v23 }
  0x27   : > { %408 = vmatpush.msra.mxu1 %v387_v25 }
  0x28   : > { %605 = vmatpush.msrb.mxu3 %v389_v21  ;;  %608 = vmatpush.msra.mxu2 %v387_v25  ;;  %v666_v21 = vld [vmem:[%s974_s4] ss:$0 sm:$0xff] }
  0x29   : > { %409 = vmatpush.msra.mxu1 %v386_v26 }
  0x2a   : > { %607 = vmatpush.msrb.mxu3 %v388_v23  ;;  %610 = vmatpush.msra.mxu2 %v386_v26 }
  0x2b   : > { %568 = vmatmul.msk.f32.gmra.mxu0 %vm250_vm0, %v228_v6  ;;  %578 = vmatmul.msk.f32.gmra.mxu3 %vm250_vm0, %v238_v12 }
  0x2c   : > { %410 = vmatpush.msra.mxu1 %v385_v27  ;;  %609 = vmatpush.msrb.mxu3 %v387_v25 }
  0x2d   : > { %612 = vmatpush.msra.mxu2 %v385_v27 }
  0x2e   : > { %411 = vmatpush.msra.mxu1 %v384_v29  ;;  %611 = vmatpush.msrb.mxu3 %v386_v26 }
  0x2f   : > { %614 = vmatpush.msra.mxu2 %v384_v29 }
  0x30   : > { %412 = vmatpush.msra.mxu1 %v383_v31  ;;  %613 = vmatpush.msrb.mxu3 %v385_v27 }
  0x31   : > { %616 = vmatpush.msra.mxu2 %v383_v31 }
  0x32   : > { %615 = vmatpush.msrb.mxu3 %v384_v29  ;;  %413 = vmatpush.msra.mxu1 %v382_v33 }
  0x33   : > { %569 = vmatmul.msk.f32.gmra.mxu0 %vm250_vm0, %v229_v7  ;;  %579 = vmatmul.msk.f32.gmra.mxu3 %vm250_vm0, %v239_v18 }
  0x34   : > { %617 = vmatpush.msrb.mxu3 %v383_v31  ;;  %618 = vmatpush.msra.mxu2 %v382_v33 }
  0x35   : > { %414 = vmatpush.msra.mxu1 %v381_v34 }
  0x36   : > { %619 = vmatpush.msrb.mxu3 %v382_v33  ;;  %620 = vmatpush.msra.mxu2 %v381_v34 }
  0x37   : > { %415 = vmatpush.msra.mxu1 %v380_v35 }
  0x38   : > { %621 = vmatpush.msrb.mxu3 %v381_v34  ;;  %622 = vmatpush.msra.mxu2 %v380_v35 }
  0x3a   : > { %623 = vmatpush.msrb.mxu3 %v380_v35 }
  0x3b   : > { %570 = vmatmul.msk.f32.gmra.mxu0 %vm250_vm0, %v230_v9  ;;  %580 = vmatmul.msk.f32.gmra.mxu3 %vm250_vm0, %v240_v24 }
  0x43   : > { %571 = vmatmul.msk.f32.gmra.mxu0 %vm250_vm0, %v231_v11  ;;  %581 = vmatmul.msk.f32.gmra.mxu3 %vm250_vm0, %v241_v30 }
  0x4b   : > { %572 = vmatmul.msk.f32.gmra.mxu0 %vm250_vm0, %v232_v16 }
  0x53   : > { %573 = vmatmul.msk.f32.gmra.mxu0 %vm250_vm0, %v233_v22 }
  0x5b   : > { %574 = vmatmul.msk.f32.gmra.mxu0 %vm250_vm0, %v234_v28 }
  0x63   : > { %575 = vmatmul.msk.f32.gmra.mxu0 %vm250_vm0, %v235_v32 }
  0x98   : > { %v316_v37 = vpop.f32.mrf.mxu0 }
  0x99   : > { %v317_v38 = vadd.f32 %v665_v36, %v316_v37 }
  0x9b   : > { %v364_v39 = vmax.f32 %v317_v38, 0.0 }
  0x9d   : > { %416 = vmatmul.f32.vlgmr.msra.gmra.mxu1 %v364_v39 }
  0x9e   : > { %v346_v50 = vpop.f32.mrf.mxu3 }
  0x9f   : > { %v347_v13 = vadd.f32 %v665_v36, %v346_v50 }
  0xa0   : > { %v319_v40 = vpop.f32.mrf.mxu0 }
  0xa1   : > { %v320_v41 = vadd.f32 %v665_v36, %v319_v40  ;;  %v374_v14 = vmax.f32 %v347_v13, 0.0 }
  0xa3   : > { %v365_v42 = vmax.f32 %v320_v41, 0.0 }
  0xa5   : > { %419 = vmatmul.f32.gmra.mxu1 %v365_v42 }
  0xa6   : > { %v349_v54 = vpop.f32.mrf.mxu3 }
  0xa7   : > { %v350_v15 = vadd.f32 %v665_v36, %v349_v54 }
  0xa8   : > { %v322_v43 = vpop.f32.mrf.mxu0 }
  0xa9   : > { %v323_v44 = vadd.f32 %v665_v36, %v322_v43  ;;  %v375_v16 = vmax.f32 %v350_v15, 0.0 }
  0xab   : > { %v366_v45 = vmax.f32 %v323_v44, 0.0 }
  0xad   : > { %422 = vmatmul.f32.gmra.mxu1 %v366_v45 }
  0xae   : > { %v352_v58 = vpop.f32.mrf.mxu3 }
  0xaf   : > { %v353_v17 = vadd.f32 %v665_v36, %v352_v58 }
  0xb0   : > { %v325_v46 = vpop.f32.mrf.mxu0 }
  0xb1   : > { %v326_v47 = vadd.f32 %v665_v36, %v325_v46  ;;  %v376_v18 = vmax.f32 %v353_v17, 0.0 }
  0xb3   : > { %v367_v48 = vmax.f32 %v326_v47, 0.0 }
  0xb5   : > { %425 = vmatmul.f32.gmra.mxu1 %v367_v48 }
  0xb6   : > { %v355_v62 = vpop.f32.mrf.mxu3 }
  0xb7   : > { %v356_v19 = vadd.f32 %v665_v36, %v355_v62 }
  0xb8   : > { %v328_v49 = vpop.f32.mrf.mxu0 }
  0xb9   : > { %v329_v51 = vadd.f32 %v665_v36, %v328_v49  ;;  %v377_v20 = vmax.f32 %v356_v19, 0.0 }
  0xbb   : > { %v368_v52 = vmax.f32 %v329_v51, 0.0 }
  0xbd   : > { %428 = vmatmul.f32.gmra.mxu1 %v368_v52 }
  0xbe   : > { %v358_v2 = vpop.f32.mrf.mxu3 }
  0xbf   : > { %v359_v4 = vadd.f32 %v665_v36, %v358_v2 }
  0xc0   : > { %v331_v53 = vpop.f32.mrf.mxu0 }
  0xc1   : > { %v332_v55 = vadd.f32 %v665_v36, %v331_v53  ;;  %v378_v6 = vmax.f32 %v359_v4, 0.0 }
  0xc3   : > { %v369_v56 = vmax.f32 %v332_v55, 0.0  ;;  %458 = vmatmul.f32.vlgmr.msrb.gmra.mxu3 %v378_v6 }
  0xc5   : > { %431 = vmatmul.f32.gmra.mxu1 %v369_v56 }
  0xc6   : > { %v361_v8 = vpop.f32.mrf.mxu3 }
  0xc7   : > { %v362_v10 = vadd.f32 %v665_v36, %v361_v8 }
  0xc8   : > { %v334_v57 = vpop.f32.mrf.mxu0 }
  0xc9   : > { %v335_v59 = vadd.f32 %v665_v36, %v334_v57  ;;  %v379_v12 = vmax.f32 %v362_v10, 0.0 }
  0xcb   : > { %v370_v60 = vmax.f32 %v335_v59, 0.0  ;;  %461 = vmatmul.f32.gmra.mxu3 %v379_v12 }
  0xcd   : > { %434 = vmatmul.f32.gmra.mxu1 %v370_v60 }
  0xd0   : > { %v337_v61 = vpop.f32.mrf.mxu0 }
  0xd1   : > { %v338_v63 = vadd.f32 %v665_v36, %v337_v61 }
  0xd3   : > { %v371_v0 = vmax.f32 %v338_v63, 0.0 }
  0xd5   : > { %437 = vmatmul.f32.vlgmr.msra.gmra.mxu2 %v371_v0 }
  0xd8   : > { %v340_v1 = vpop.f32.mrf.mxu0 }
  0xd9   : > { %v341_v3 = vadd.f32 %v665_v36, %v340_v1 }
  0xdb   : > { %v372_v5 = vmax.f32 %v341_v3, 0.0 }
  0xdd   : > { %440 = vmatmul.f32.gmra.mxu2 %v372_v5 }
  0xe0   : > { %v343_v7 = vpop.f32.mrf.mxu0 }
  0xe1   : > { %v344_v9 = vadd.f32 %v665_v36, %v343_v7 }
  0xe3   : > { %v373_v11 = vmax.f32 %v344_v9, 0.0 }
  0xe5   : > { %443 = vmatmul.f32.gmra.mxu2 %v373_v11 }
  0xed   : > { %446 = vmatmul.f32.gmra.mxu2 %v374_v14 }
  0xf5   : > { %449 = vmatmul.f32.gmra.mxu2 %v375_v16 }
  0xfd   : > { %452 = vmatmul.f32.gmra.mxu2 %v376_v18 }
 0x105   : > { %455 = vmatmul.f32.gmra.mxu2 %v377_v20 }
 0x11a   : > { %v417_v22 = vpop.f32.mrf.mxu1 }
 0x11b   : > { %v418_v23 = vadd.f32 %v666_v21, %v417_v22 }
 0x11d   : > { %465 = vst [vmem:[%s918_s9] sm:$0xff] %v418_v23 }
 0x122   : > { %v420_v24 = vpop.f32.mrf.mxu1 }
 0x123   : > { %v421_v25 = vadd.f32 %v666_v21, %v420_v24 }
 0x125   : > { %466 = vst [vmem:[%s918_s9 + $0x8] sm:$0xff] %v421_v25 }
 0x12a   : > { %v423_v26 = vpop.f32.mrf.mxu1 }
 0x12b   : > { %v424_v27 = vadd.f32 %v666_v21, %v423_v26 }
 0x12d   : > { %467 = vst [vmem:[%s918_s9 + $0x10] sm:$0xff] %v424_v27 }
 0x132   : > { %v426_v28 = vpop.f32.mrf.mxu1 }
 0x133   : > { %v427_v29 = vadd.f32 %v666_v21, %v426_v28 }
 0x135   : > { %468 = vst [vmem:[%s918_s9 + $0x18] sm:$0xff] %v427_v29 }
 0x13a   : > { %v429_v30 = vpop.f32.mrf.mxu1 }
 0x13b   : > { %v430_v31 = vadd.f32 %v666_v21, %v429_v30 }
 0x13d   : > { %469 = vst [vmem:[%s918_s9 + $0x20] sm:$0xff] %v430_v31 }
 0x142   : > { %v432_v32 = vpop.f32.mrf.mxu1 }
 0x143   : > { %v433_v33 = vadd.f32 %v666_v21, %v432_v32 }
 0x145   : > { %470 = vst [vmem:[%s918_s9 + $0x28] sm:$0xff] %v433_v33 }
 0x146   : > { %v459_v39 = vpop.f32.mrf.mxu3 }
 0x147   : > { %v460_v41 = vadd.f32 %v666_v21, %v459_v39 }
 0x149   : > { %479 = vst [vmem:[%s918_s9 + $0x70] sm:$0xff] %v460_v41 }
 0x14a   : > { %v435_v34 = vpop.f32.mrf.mxu1 }
 0x14b   : > { %v436_v35 = vadd.f32 %v666_v21, %v435_v34 }
 0x14d   : > { %471 = vst [vmem:[%s918_s9 + $0x30] sm:$0xff] %v436_v35 }
 0x14e   : > { %v462_v43 = vpop.f32.mrf.mxu3 }
 0x14f   : > { %v463_v45 = vadd.f32 %v666_v21, %v462_v43 }
 0x151   : > { %480 = vst [vmem:[%s918_s9 + $0x78] sm:$0xff] %v463_v45 }
 0x158   : > { %v438_v36 = vpop.f32.mrf.mxu2 }
 0x159   : > { %v439_v37 = vadd.f32 %v666_v21, %v438_v36 }
 0x15b   : > { %472 = vst [vmem:[%s918_s9 + $0x38] sm:$0xff] %v439_v37 }
 0x160   : > { %v441_v38 = vpop.f32.mrf.mxu2 }
 0x161   : > { %v442_v40 = vadd.f32 %v666_v21, %v441_v38 }
 0x163   : > { %473 = vst [vmem:[%s918_s9 + $0x40] sm:$0xff] %v442_v40 }
 0x168   : > { %v444_v42 = vpop.f32.mrf.mxu2 }
 0x169   : > { %v445_v44 = vadd.f32 %v666_v21, %v444_v42 }
 0x16b   : > { %474 = vst [vmem:[%s918_s9 + $0x48] sm:$0xff] %v445_v44 }
 0x170   : > { %v447_v46 = vpop.f32.mrf.mxu2 }
 0x171   : > { %v448_v47 = vadd.f32 %v666_v21, %v447_v46 }
 0x173   : > { %475 = vst [vmem:[%s918_s9 + $0x50] sm:$0xff] %v448_v47 }
 0x178   : > { %v450_v48 = vpop.f32.mrf.mxu2 }
 0x179   : > { %v451_v49 = vadd.f32 %v666_v21, %v450_v48 }
 0x17b   : > { %476 = vst [vmem:[%s918_s9 + $0x58] sm:$0xff] %v451_v49 }
 0x180   : > { %v453_v50 = vpop.f32.mrf.mxu2 }
 0x181   : > { %v454_v51 = vadd.f32 %v666_v21, %v453_v50 }
 0x183   : > { %477 = vst [vmem:[%s918_s9 + $0x60] sm:$0xff] %v454_v51 }
 0x188   : > { %v456_v52 = vpop.f32.mrf.mxu2 }
 0x189   : > { %v457_v53 = vadd.f32 %v666_v21, %v456_v52 }
 0x18b   : > { %478 = vst [vmem:[%s918_s9 + $0x68] sm:$0xff] %v457_v53 }
 0x18c   : > { %694 = shalt.err (!%p691_p3)
}
 0x18d   : > { %s731_s30 = smov 128   ;;  %s732_s8 = smov 8  }
 0x18e   : > { %624 = dma.vmem_to_hbm [thread:$0]  (%p801_p5), %s495_s14, 2048, %s497_s15, %s482_s16, %s731_s30, %s731_s30, %s732_s8  }
 0x18f PF: > { %p630_p4 = scmp.ge.s32.totalorder %s729_s21, 2  ;;  %s511_s9 = sand.u32 1, %s717_s18  }
 0x190   : > { %s512_s10 = scalar_lea.sflag [#allocation3], %s511_s9 }
 0x191   : > { %p627_p7 = pnand %p630_p4, %p805_p6 }
 0x193   : > { %p628_p8 = pneg %p627_p7 }
 0x195   : > { %712 = dma.done.wait (%p628_p8), %s512_s10, 2048  }
 0x196   : > { %714 = vsyncadd (%p628_p8), %s512_s10, 4294965248  ;;  %p15_p9 = scmp.ge.s32.totalorder %s788_s24, 4   ;;  %s978_s18 = smov %s721_s19 }
 0x197   : > { %s979_s19 = smov %s725_s20  ;;  %s980_s20 = smov %s799_s27 }
 0x198   : > { %s981_s21 = smov %s788_s24  ;;  %17 = sbr.rel (!%p15_p9) target bundleno = 3 (0x3), region = 75 }
 0x19d   :  { %518 = vsyncpa [#allocation3], 1 }
 0x19e   :  { %520 = vsyncpa [#allocation3 + $0x1], 1 }

</bundles_post_ra>
